<compile_context>
chip_gen: v7x
topology: tpu7x:2x2x1
jax: 0.10.0
libtpu: 0.0.40
codegen_flags: <defaults>
</compile_context>

<pallas_src>
import numpy as np
import jax
import jax.numpy as jnp
from jax.experimental import pallas as pl
from jax.experimental.pallas import tpu as pltpu


# ---------------- buffer construction (numpy, matches torch __init__) --------

def generate_wavefront_basis(num_feats, basis_block, period_length):
    period_coef = 2.0 * np.pi / period_length
    basis = np.tile(np.asarray([basis_block], dtype=np.float32), (num_feats, 1))
    powers = (2.0 ** np.arange(num_feats)).astype(np.float32).reshape(-1, 1)
    return (basis * powers * period_coef).astype(np.float32)


def generate_anti_diag_basis(n):
    return generate_wavefront_basis(n, [1.0 / np.sqrt(2), 1.0 / np.sqrt(2)], 4.0 * np.sqrt(2))


def generate_diag_main_basis(n):
    return generate_wavefront_basis(n, [-1.0 / np.sqrt(2), 1.0 / np.sqrt(2)], 4.0 * np.sqrt(2))


def generate_horizontal_basis(n):
    return generate_wavefront_basis(n, [0.0, 1.0], 4.0)


def generate_vertical_basis(n):
    return generate_wavefront_basis(n, [1.0, 0.0], 4.0)


def generate_logarithmic_basis(resolution, max_num_feats=float('inf'),
                               remove_lowest_freq=False, use_diagonal=True):
    n = int(np.ceil(np.log2(resolution)))
    bases = [generate_horizontal_basis(n), generate_vertical_basis(n)]
    if use_diagonal:
        bases.extend([generate_diag_main_basis(n), generate_anti_diag_basis(n)])
    if remove_lowest_freq:
        bases = [b[1:] for b in bases]
    while n * len(bases) > max_num_feats and len(bases) > 2:
        bases = bases[:-1]
    basis = np.concatenate(bases, axis=0)
    assert basis.shape[0] <= max_num_feats
    return basis.astype(np.float32)


def generate_coords(img_size, align_corners=False):
    # matches torch generate_coords (batch axis dropped; added back in wrapper)
    if align_corners:
        row = np.linspace(-1.0, 1.0, img_size, dtype=np.float32)
    else:
        row = (np.arange(img_size, dtype=np.float32) / img_size) * 2.0 - 1.0
    x_coords = np.tile(row.reshape(1, -1), (img_size, 1))              # [i, j] = row[j]
    y_coords = x_coords.T[::-1, :]                                     # [i, j] = row[size-1-i]
    coords = np.stack([x_coords, y_coords], axis=0)                    # (2, H, W)
    return coords.reshape(2, img_size * img_size).astype(np.float32)   # (2, H*W)


# ---------------- Pallas kernels ---------------------------------------------

def _coord_embs_broadcast_kernel(basis_ref, coords_ref, out_ref):
    # One grid step covers the whole batch chunk of this HW tile.
    # basis_ref:  (D, 2)           VMEM
    # coords_ref: (2, T_HW)        VMEM
    # out_ref:    (Bt, D, T_HW)    VMEM
    x = coords_ref[0:1, :]                                         # (1, T)
    y = coords_ref[1:2, :]                                         # (1, T)
    emb = jnp.sin(basis_ref[:, 0:1] * x + basis_ref[:, 1:2] * y)   # (D, T) VPU+EUP
    out_ref[...] = jnp.broadcast_to(emb[None, :, :], out_ref.shape)


def _coord_embs_batched_kernel(basis_ref, coords_ref, out_ref, emb_scratch):
    # grid = (n_hw, n_b); the batch-chunk axis is the innermost ("arbitrary") one.
    # basis_ref:   (D, 2)          VMEM (same block every step)
    # coords_ref:  (2, T_HW)       VMEM (one HW tile)
    # out_ref:     (Bt, D, T_HW)   VMEM (one (batch-chunk, hw-tile) output slab)
    # emb_scratch: (D, T_HW)       VMEM scratch, persists across grid steps
    b = pl.program_id(1)

    @pl.when(b == 0)
    def _():
        # K=2 contraction as a VPU broadcast-FMA; computed once per HW tile.
        x = coords_ref[0:1, :]
        y = coords_ref[1:2, :]
        emb_scratch[...] = jnp.sin(basis_ref[:, 0:1] * x + basis_ref[:, 1:2] * y)

    # Every batch step (including b == 0) just replays the cached tile.
    out_ref[...] = jnp.broadcast_to(emb_scratch[...][None, :, :], out_ref.shape)


# ---------------- tiling heuristics -------------------------------------------

_LANE = 128


def _round_up(x, m):
    return ((x + m - 1) // m) * m


def _choose_tiling(batch_size, d, hw, *, max_hw_tile=None, max_batch_block=None,
                   target_step_bytes=8 << 20, vmem_budget=24 << 20):
    """Pick (t_hw, n_hw, bt, n_b) for the tiled writeback path.

    * t_hw is lane-dense (multiple of 128, capped at 32K lanes) and, whenever
      HW >= 256, at most ceil(HW/2) so the "parallel" HW axis always has >= 2
      tiles (lets v7x megacore shard the writeback across both TensorCores).
      A non-dividing HW is handled by pl.cdiv + masked tail store.
    * bt (batch rows folded into one output block) grows until each grid step
      writes ~target_step_bytes, under a per-step VMEM budget that fits inside
      the 32 MiB vmem_limit used by the caller on v5e/v6e/v7x alike.
    """
    cap = 32768 if max_hw_tile is None else max_hw_tile
    if hw < 2 * _LANE:
        t_hw = hw                       # block == full dim (allowed by layout rules)
    else:
        t_hw = min(_round_up(pl.cdiv(hw, 2), _LANE), max(_round_up(cap, _LANE), _LANE))
        t_hw = max(t_hw, _LANE)
    n_hw = pl.cdiv(hw, t_hw)

    def step_vmem_bytes(bt):
        # double-buffered out block + emb scratch + double-buffered coords block
        # (2 rows pad to 8 sublanes) + basis (negligible).
        return 4 * (2 * bt * d * t_hw + d * t_hw + 2 * 8 * t_hw + 2 * d * 2)

    bt_cap = batch_size if max_batch_block is None else max(1, min(batch_size, max_batch_block))
    bt = 1
    while (bt < bt_cap
           and bt * d * t_hw * 4 < target_step_bytes
           and step_vmem_bytes(bt + 1) <= vmem_budget):
        bt += 1
    # Keep the batch grid exact (avoid relying on leading-dim tail masking).
    while batch_size % bt:
        bt -= 1
    n_b = batch_size // bt
    return t_hw, n_hw, bt, n_b


# ---------------- forward ------------------------------------------------------

def coords_input_forward(basis, coords_flat, batch_size, resolution, *,
                         materialize_batch=True, force_tiled=False,
                         _max_hw_tile=None, _max_batch_block=None):
    """Equivalent of CoordsInput.forward(batch_size): (B, D, res, res).

    materialize_batch=False returns the batch-invariant (1, D, res, res) tensor
    (the output is identical across batch rows; skipping the replication is a
    B-fold reduction in HBM writeback if the consumer can broadcast).
    """
    D = basis.shape[0]
    HW = coords_flat.shape[1]
    B = batch_size if materialize_batch else 1
    out_bytes = B * D * HW * 4

    if out_bytes <= (4 << 20) and not force_tiled:
        # Tiny output: one grid step, one broadcast store (no per-step overhead).
        out = pl.pallas_call(
            _coord_embs_broadcast_kernel,
            out_shape=jax.ShapeDtypeStruct((B, D, HW), jnp.float32),
            grid_spec=pltpu.PrefetchScalarGridSpec(
                num_scalar_prefetch=0,
                grid=(1,),
                in_specs=[
                    pl.BlockSpec((D, 2), lambda i: (0, 0)),
                    pl.BlockSpec((2, HW), lambda i: (0, 0)),
                ],
                out_specs=pl.BlockSpec((B, D, HW), lambda i: (0, 0, 0)),
            ),
            compiler_params=pltpu.CompilerParams(
                dimension_semantics=("arbitrary",)),
        )(basis, coords_flat)
    else:
        t_hw, n_hw, bt, n_b = _choose_tiling(
            B, D, HW, max_hw_tile=_max_hw_tile, max_batch_block=_max_batch_block)

        if n_b == 1:
            # Whole batch chunk per step -> no scratch / carry needed at all.
            kernel = _coord_embs_broadcast_kernel
            grid = (n_hw,)
            in_specs = [pl.BlockSpec((D, 2), lambda h: (0, 0)),
                        pl.BlockSpec((2, t_hw), lambda h: (0, h))]
            out_specs = pl.BlockSpec((bt, D, t_hw), lambda h: (0, 0, h))
            scratch = []
            dims = ("parallel",)
        else:
            # Batch split across steps: cache the tile in VMEM scratch at b == 0.
            # NOTE: the batch grid axis MUST stay "arbitrary" -- emb_scratch is
            # written at b == 0 and reused by later batch steps of the same HW
            # tile; marking it "parallel" (megacore) would break that carry.
            kernel = _coord_embs_batched_kernel
            grid = (n_hw, n_b)
            in_specs = [pl.BlockSpec((D, 2), lambda h, b: (0, 0)),
                        pl.BlockSpec((2, t_hw), lambda h, b: (0, h))]
            out_specs = pl.BlockSpec((bt, D, t_hw), lambda h, b: (b, 0, h))
            scratch = [pltpu.VMEM((D, t_hw), jnp.float32)]
            dims = ("parallel", "arbitrary")

        out = pl.pallas_call(
            kernel,
            out_shape=jax.ShapeDtypeStruct((B, D, HW), jnp.float32),
            grid_spec=pltpu.PrefetchScalarGridSpec(
                num_scalar_prefetch=0,
                grid=grid,
                in_specs=in_specs,
                out_specs=out_specs,
                scratch_shapes=scratch,
            ),
            compiler_params=pltpu.CompilerParams(
                dimension_semantics=dims,
                # Working set is budgeted <= ~24 MiB in _choose_tiling; 32 MiB
                # is safe on v5e/v6e (128 MiB physical) and v7x (64 MiB).
                vmem_limit_bytes=32 * 1024 * 1024),
        )(basis, coords_flat)

    return out.reshape(B, D, resolution, resolution)


# ---------------- reference (pure JAX) for sanity -----------------------------

def coords_input_reference(basis, coords_flat, batch_size, resolution):
    D = basis.shape[0]
    emb = jnp.sin(basis @ coords_flat).reshape(1, D, resolution, resolution)
    return jnp.tile(emb, (batch_size, 1, 1, 1))


if __name__ == "__main__":
    # unused random draw just to exercise deterministic PRNG construction
    _ = jax.random.normal(jax.random.PRNGKey(0), (2,))

    # ---- Case 1: resolution 16, batch 2 (module-scale shapes) -----------------
    resolution, batch_size = 16, 2
    basis = jnp.asarray(generate_logarithmic_basis(resolution))   # (16, 2)
    coords_flat = jnp.asarray(generate_coords(resolution))        # (2, 256)
    ref = coords_input_reference(basis, coords_flat, batch_size, resolution)

    # small (single grid step) path
    out_small = jax.block_until_ready(
        coords_input_forward(basis, coords_flat, batch_size, resolution))
    assert out_small.shape == (batch_size, basis.shape[0], resolution, resolution)
    np.testing.assert_allclose(np.asarray(out_small), np.asarray(ref),
                               atol=1e-5, rtol=1e-5)

    # tiled path with >=2 HW tiles and the whole batch folded into one block
    out_tiled = jax.block_until_ready(
        coords_input_forward(basis, coords_flat, batch_size, resolution,
                             force_tiled=True))
    np.testing.assert_allclose(np.asarray(out_tiled), np.asarray(ref),
                               atol=1e-5, rtol=1e-5)

    # batch-invariant (non-materialized) variant
    out_b1 = jax.block_until_ready(
        coords_input_forward(basis, coords_flat, batch_size, resolution,
                             materialize_batch=False))
    np.testing.assert_allclose(np.asarray(out_b1), np.asarray(ref[:1]),
                               atol=1e-5, rtol=1e-5)

    # ---- Case 2: non-power-of-two resolution 20, batch 3 -----------------------
    # HW = 400 -> t_hw = 256, n_hw = 2 with a masked tail store (144 valid lanes).
    resolution2, batch_size2 = 20, 3
    basis2 = jnp.asarray(generate_logarithmic_basis(resolution2))   # (20, 2)
    coords2 = jnp.asarray(generate_coords(resolution2))             # (2, 400)
    ref2 = coords_input_reference(basis2, coords2, batch_size2, resolution2)

    # whole batch per step (broadcast kernel, masked HW tail)
    out2 = jax.block_until_ready(
        coords_input_forward(basis2, coords2, batch_size2, resolution2,
                             force_tiled=True))
    np.testing.assert_allclose(np.asarray(out2), np.asarray(ref2),
                               atol=1e-5, rtol=1e-5)

    # batch split across steps (scratch carry across the "arbitrary" batch axis)
    out2_carry = jax.block_until_ready(
        coords_input_forward(basis2, coords2, batch_size2, resolution2,
                             force_tiled=True, _max_batch_block=1))
    np.testing.assert_allclose(np.asarray(out2_carry), np.asarray(ref2),
                               atol=1e-5, rtol=1e-5)

    # TODO(synk): the torch module's python-side coord_embs_cache (stateful memo of
    # the repeated tensor across forward() calls) has no kernel equivalent; the
    # kernel recomputes/copies per call instead.
    print("KERNEL_OK")
</pallas_src>

<mosaic_0001>
module attributes {stable_mosaic.version = 11 : i64} {
  func.func @_coord_embs_broadcast_kernel(%arg0: i32, %arg1: memref<16x2xf32, #tpu.memory_space<vmem>>, %arg2: memref<2x256xf32, #tpu.memory_space<vmem>>, %arg3: memref<2x16x256xf32, #tpu.memory_space<vmem>>) attributes {dimension_semantics = [#tpu.dimension_semantics<arbitrary>], iteration_bounds = array<i64: 1>, scalar_prefetch = 0 : i64, scratch_operands = 0 : i64, tpu.core_type = #tpu.core_type<tc>, window_params = [{pipeline_mode = #tpu.pipeline_mode<synchronous>, transform_indices = @transform_0, window_bounds = array<i64: 16, 2>}, {pipeline_mode = #tpu.pipeline_mode<synchronous>, transform_indices = @transform_1, window_bounds = array<i64: 2, 256>}, {pipeline_mode = #tpu.pipeline_mode<synchronous>, transform_indices = @transform_2, window_bounds = array<i64: 2, 16, 256>}]} {
    %c0 = arith.constant 0 : index
    %c0_0 = arith.constant 0 : index
    %0 = vector.load %arg2[%c0, %c0_0] : memref<2x256xf32, #tpu.memory_space<vmem>>, vector<1x256xf32>
    %c1 = arith.constant 1 : index
    %c0_1 = arith.constant 0 : index
    %1 = vector.load %arg2[%c1, %c0_1] : memref<2x256xf32, #tpu.memory_space<vmem>>, vector<1x256xf32>
    %c0_2 = arith.constant 0 : index
    %c0_3 = arith.constant 0 : index
    %2 = vector.load %arg1[%c0_2, %c0_3] : memref<16x2xf32, #tpu.memory_space<vmem>>, vector<16x1xf32>
    %3 = vector.broadcast %2 : vector<16x1xf32> to vector<16x256xf32>
    %4 = vector.broadcast %0 : vector<1x256xf32> to vector<16x256xf32>
    %5 = arith.mulf %3, %4 : vector<16x256xf32>
    %c0_4 = arith.constant 0 : index
    %c1_5 = arith.constant 1 : index
    %6 = vector.load %arg1[%c0_4, %c1_5] : memref<16x2xf32, #tpu.memory_space<vmem>>, vector<16x1xf32>
    %7 = vector.broadcast %6 : vector<16x1xf32> to vector<16x256xf32>
    %8 = vector.broadcast %1 : vector<1x256xf32> to vector<16x256xf32>
    %9 = arith.mulf %7, %8 : vector<16x256xf32>
    %10 = arith.addf %5, %9 : vector<16x256xf32>
    %11 = math.sin %10 : vector<16x256xf32>
    %12 = vector.shape_cast %11 : vector<16x256xf32> to vector<1x16x256xf32>
    %13 = vector.shape_cast %12 : vector<1x16x256xf32> to vector<1x16x256xf32>
    %14 = vector.broadcast %13 : vector<1x16x256xf32> to vector<2x16x256xf32>
    %c0_6 = arith.constant 0 : index
    %c0_7 = arith.constant 0 : index
    %c0_8 = arith.constant 0 : index
    %15 = vector.load %arg3[%c0_6, %c0_7, %c0_8] : memref<2x16x256xf32, #tpu.memory_space<vmem>>, vector<2x16x256xf32>
    tpu.vector_store %arg3[%c0_6, %c0_7, %c0_8], %14 {strides = array<i32>} : memref<2x16x256xf32, #tpu.memory_space<vmem>>, vector<2x16x256xf32>,
    return
  }
  func.func @transform_0(%arg0: i32) -> (i32, i32) {
    %c0_i32 = arith.constant 0 : i32
    %c0_i32_0 = arith.constant 0 : i32
    %c0_i32_1 = arith.constant 0 : i32
    return %c0_i32, %c0_i32_0 : i32, i32
  }
  func.func @transform_1(%arg0: i32) -> (i32, i32) {
    %c0_i32 = arith.constant 0 : i32
    %c0_i32_0 = arith.constant 0 : i32
    %c0_i32_1 = arith.constant 0 : i32
    return %c0_i32, %c0_i32_0 : i32, i32
  }
  func.func @transform_2(%arg0: i32) -> (i32, i32, i32) {
    %c0_i32 = arith.constant 0 : i32
    %c0_i32_0 = arith.constant 0 : i32
    %c0_i32_1 = arith.constant 0 : i32
    %c0_i32_2 = arith.constant 0 : i32
    return %c0_i32, %c0_i32_0, %c0_i32_1 : i32, i32, i32
  }
}

</mosaic_0001>

<bundles_post_ra>
// kernel: tpu_custom_call.1
= control target key start
LH: loop header
LB: loop body
LE: loop exit
PB: predicated region body
PF: predicated region fallthrough
CT: control target
= control target key end

     0   :  { %s944_s0 = inlined_call_operand.vmem [shape: f32[16,2], index: 0, kind: input, shape index: {}]   ;;  %s945_s1 = inlined_call_operand.vmem [shape: f32[2,256], index: 1, kind: input, shape index: {}]   ;;  %s946_s2 = inlined_call_operand.hbm [shape: f32[2,16,256], index: 2, kind: output, shape index: {}]  }
   0x1   :  { %v15_v0 = vld [vmem:[%s944_s0] sm:$0xff] }
   0x2   :  { %7 = vsyncpa [#allocation3], 0  ;;  %v596_v1 = vmov 1   ;;  %v597_v2 = vmov 0   ;;  %v16_v3 = vld [vmem:[%s944_s0 + $0x8] sm:$0xff]  ;;  %v28_v4 = vlaneseq  ;;  %s604_s0 = smov [#allocation2]  }
   0x3   :  { %554 = vset.pattern.permute.xlu1 %v596_v1  ;;  %553 = vset.pattern.permute.xlu0 %v597_v2  ;;  %v509_v8 = vld [vmem:[%s945_s1 + $0x1] ss:$2 sm:$0x3]  ;;  %v12_v9 = vld [vmem:[%s945_s1] ss:$2 sm:$0x3] }
   0x4   :  { %43 = vperm.xlu1 %554, %v15_v0   ;;  %19 = vperm.xlu0 %553, %v15_v0   ;;  %v29_v5 = vshrl.u32 %v28_v4, 7  ;;  %v598_v54 = vmov 683565275   ;;  %v599_v58 = vmov 2475754826   ;;  %s498_s1 = sshll.u32 %s604_s0, 4  ;;  %s499_s1 = int_to_ptr.vmem [resolvable:$true] %s498_s1 }
   0x5   :  { %v600_v60 = vmov 2131351028   ;;  %v601_v62 = vmov 2102212464   ;;  %v602_v0 = vmov 920167782   ;;  %p577_p1 = scmp.lt.s32.totalorder %s499_s1, %s499_s1 }
   0x6   :  { %v30_v6 = vsub.s32 0, %v29_v5  ;;  %v34_v7 = vsub.s32 1, %v29_v5  ;;  %s572_s17 = scalar_lea.vmem %s499_s1, 1024 }
   0x7   :  { %p573_p0 = scmp.ne.s32.totalorder %s499_s1, %s572_s17  ;;  %p578_p2 = scmp.lt.s32.totalorder %s572_s17, %s572_s17 }
   0x8   :  { %47 = vperm.xlu1 %554, %v16_v3   ;;  %24 = vperm.xlu0 %553, %v16_v3   ;;  %v54_v10 = vrot.slane %v509_v8, %v30_v6  ;;  %v58_v11 = vrot.slane %v509_v8, %v34_v7  ;;  %v31_v12 = vrot.slane %v12_v9, %v30_v6 }
   0x9   :  { %v35_v13 = vrot.slane %v12_v9, %v34_v7  ;;  %v603_v7 = vmov 1326507024   ;;  %p579_p3 = por %p578_p2, %p577_p1 }
   0xb   :  { %p580_p4 = pnand %p579_p3, %p573_p0 }
   0xc   :  { %555 = vset.pattern.permute.xlu0 %v596_v1 }
  0x83   :  { %v44_v14 = vpop.permute.xlu1 %43  ;;  %v20_v15 = vpop.permute.xlu0 %19 }
  0x84   :  { %v61_v16 = vmul.f32 %v54_v10, %v44_v14  ;;  %v62_v17 = vmul.f32 %v58_v11, %v44_v14  ;;  %v38_v18 = vmul.f32 %v31_v12, %v20_v15  ;;  %v39_v19 = vmul.f32 %v35_v13, %v20_v15 }
  0x86   :  { %v634_v20 = vadd.f32 %v61_v16, %v38_v18  ;;  %v636_v21 = vadd.f32 %v62_v17, %v39_v19 }
  0x87   :  { %v48_v22 = vpop.permute.xlu1 %47  ;;  %v25_v27 = vpop.permute.xlu0 %24 }
  0x88   :  { %v69_v23 = vand.u32 2147483647, %v634_v20  ;;  %v72_v24 = vand.u32 2139095040, %v634_v20  ;;  %v173_v25 = vand.u32 2147483647, %v636_v21  ;;  %v176_v26 = vand.u32 2139095040, %v636_v21 }
  0x89   :  { %v63_v30 = vmul.f32 %v54_v10, %v48_v22  ;;  %v40_v34 = vmul.f32 %v31_v12, %v25_v27  ;;  %v64_v41 = vmul.f32 %v58_v11, %v48_v22  ;;  %v41_v42 = vmul.f32 %v35_v13, %v25_v27 }
  0x8a   :  { %v73_v28 = vshrl.u32 %v72_v24, 23  ;;  %v76_v29 = vand.u32 8388607, %v69_v23  ;;  %v177_v31 = vshrl.u32 %v176_v26, 23  ;;  %v180_v32 = vand.u32 8388607, %v173_v25 }
  0x8b   :  { %v646_v38 = vadd.f32 %v63_v30, %v40_v34  ;;  %v655_v51 = vadd.f32 %v64_v41, %v41_v42  ;;  %vm71_vm13 = vcmp.lt.s32.totalorder %v634_v20, 0  ;;  %vm739_vm14 = vcmp.le.f32.partialorder %v69_v23, 0.7853982 }
  0x8c   :  { %v510_v33 = vadd.s32 4294967169, %v73_v28  ;;  %v514_v35 = vadd.s32 4294967169, %v177_v31  ;;  %v77_v36 = vor.u32 8388608, %v76_v29  ;;  %v181_v39 = vor.u32 8388608, %v180_v32 }
  0x8d   :  { %v280_v43 = vand.u32 2139095040, %v646_v38  ;;  %v277_v52 = vand.u32 2147483647, %v646_v38 }
  0x8e   :  { %v79_v37 = vadd.s32 1, %v510_v33  ;;  %v183_v40 = vadd.s32 1, %v514_v35  ;;  %v649_v47 = vshll.u32 %v77_v36, 8  ;;  %v653_v50 = vshll.u32 %v181_v39, 8 }
  0x8f   :  { %v659_v57 = vshrl.u32 %v280_v43, 23 }
  0x90   :  { %vm80_vm0 = vcmp.gt.s32.totalorder %v79_v37, 0  ;;  %vm184_vm1 = vcmp.gt.s32.totalorder %v183_v40, 0 }
  0x91   :  { %v81_v44 = vsel %vm80_vm0, %v79_v37, 0  ;;  %v185_v48 = vsel %vm184_vm1, %v183_v40, 0 }
  0x92   :  { %v82_v45 = vshrl.u32 %v81_v44, 5  ;;  %v83_v46 = vand.u32 31, %v81_v44  ;;  %v651_v49 = vshrl.u32 %v185_v48, 5  ;;  %v187_v56 = vand.u32 31, %v185_v48 }
  0x94   :  { %v84_v53 = vsub.s32 32, %v83_v46  ;;  %v86_v55 = vshll.u32 %v598_v54, %v83_v46  ;;  %v89_v59 = vshll.u32 %v599_v58, %v83_v46  ;;  %v92_v61 = vshll.u32 %v600_v60, %v83_v46 }
  0x95   :  { %v95_v63 = vshll.u32 %v601_v62, %v83_v46  ;;  %v98_v1 = vshll.u32 %v602_v0, %v83_v46  ;;  %vm101_vm2 = vcmp.lt.s32.totalorder %v82_v45, 1  ;;  %vm102_vm3 = vcmp.lt.s32.totalorder %v82_v45, 2 }
  0x96   :  { %v87_v2 = vshrl.u32 %v599_v58, %v84_v53  ;;  %v90_v3 = vshrl.u32 %v600_v60, %v84_v53  ;;  %v93_v4 = vshrl.u32 %v601_v62, %v84_v53  ;;  %v85_v5 = vshrl.u32 %v598_v54, %v84_v53 }
  0x97   :  { %v96_v6 = vshrl.u32 %v602_v0, %v84_v53  ;;  %v99_v8 = vshrl.u32 %v603_v7, %v84_v53  ;;  %v188_v12 = vsub.s32 32, %v187_v56  ;;  %vm103_vm4 = vcmp.lt.s32.totalorder %v82_v45, 3 }
  0x98   :  { %v88_v9 = vor.u32 %v87_v2, %v86_v55  ;;  %v91_v10 = vor.u32 %v90_v3, %v89_v59  ;;  %v94_v11 = vor.u32 %v93_v4, %v92_v61  ;;  %vm104_vm5 = vcmp.lt.s32.totalorder %v82_v45, 4 }
  0x99   :  { %v97_v13 = vor.u32 %v96_v6, %v95_v63  ;;  %v100_v14 = vor.u32 %v99_v8, %v98_v1  ;;  %v190_v26 = vshll.u32 %v598_v54, %v187_v56  ;;  %v191_v29 = vshrl.u32 %v599_v58, %v188_v12 }
  0x9a   :  { %v105_v15 = vsel %vm101_vm2, %v85_v5, %v88_v9  ;;  %v106_v16 = vsel %vm104_vm5, %v94_v11, 2102212464  ;;  %v109_v17 = vsel %vm101_vm2, %v88_v9, %v91_v10  ;;  %v113_v18 = vsel %vm101_vm2, %v91_v10, %v94_v11 }
  0x9b   :  { %v107_v19 = vsel %vm103_vm4, %v91_v10, %v106_v16  ;;  %v110_v22 = vsel %vm104_vm5, %v97_v13, 920167782  ;;  %v114_v24 = vsel %vm104_vm5, %v100_v14, 1326507024  ;;  %v193_v30 = vshll.u32 %v599_v58, %v187_v56 }
  0x9c   :  { %v111_v27 = vsel %vm103_vm4, %v94_v11, %v110_v22  ;;  %v115_v28 = vsel %vm103_vm4, %v97_v13, %v114_v24  ;;  %v108_v31 = vsel %vm102_vm3, %v105_v15, %v107_v19  ;;  %v194_v34 = vshrl.u32 %v600_v60, %v188_v12 }
  0x9d   :  { %v112_v32 = vsel %vm102_vm3, %v109_v17, %v111_v27  ;;  %v116_v33 = vsel %vm102_vm3, %v113_v18, %v115_v28  ;;  %v192_v40 = vor.u32 %v191_v29, %v190_v26  ;;  %v196_v42 = vshll.u32 %v600_v60, %v187_v56 }
  0x9e   :  { %v682_v35 = vmul.u32.u64.low %v649_v47, %v116_v33  ;;  %v683_v36 = vmul.u32.u64.high %v649_v47, %v116_v33, %v682_v35  ;;  %v686_v37 = vmul.u32.u64.low %v649_v47, %v112_v32  ;;  %v687_v39 = vmul.u32.u64.high %v649_v47, %v112_v32, %v686_v37 }
  0x9f   :  { %v195_v41 = vor.u32 %v194_v34, %v193_v30  ;;  %v197_v43 = vshrl.u32 %v601_v62, %v188_v12  ;;  %v189_v44 = vshrl.u32 %v598_v54, %v188_v12  ;;  %v199_v45 = vshll.u32 %v601_v62, %v187_v56 }
  0xa0   :  { %v200_v46 = vshrl.u32 %v602_v0, %v188_v12  ;;  %v203_v48 = vshrl.u32 %v603_v7, %v188_v12  ;;  %v124_v53 = vmul.u32 %v649_v47, %v108_v31  ;;  %v202_v59 = vshll.u32 %v602_v0, %v187_v56 }
  0xa1   :  { %v198_v55 = vor.u32 %v197_v43, %v196_v42  ;;  %vm205_vm6 = vcmp.lt.s32.totalorder %v651_v49, 1  ;;  %vm126_vm7 = vc.u32 %v683_v36, %v686_v37  ;;  %v127_v61 = vadd.s32 1, %v687_v39 }
  0xa2   :  { %v201_v63 = vor.u32 %v200_v46, %v199_v45  ;;  %vm206_vm8 = vcmp.lt.s32.totalorder %v651_v49, 2  ;;  %v204_v1 = vor.u32 %v203_v48, %v202_v59  ;;  %vm207_vm9 = vcmp.lt.s32.totalorder %v651_v49, 3 }
  0xa3   :  { %vm208_vm10 = vcmp.lt.s32.totalorder %v651_v49, 4  ;;  %v213_v2 = vsel %vm205_vm6, %v192_v40, %v195_v41  ;;  %v128_v47 = vsel %vm126_vm7, %v127_v61, %v687_v39  ;;  %v217_v4 = vsel %vm205_vm6, %v195_v41, %v198_v55 }
  0xa4   :  { %v210_v3 = vsel %vm208_vm10, %v198_v55, 2102212464  ;;  %v214_v56 = vsel %vm208_vm10, %v201_v63, 920167782  ;;  %v129_v5 = vadd.s32 %v128_v47, %v124_v53  ;;  %v209_v6 = vsel %vm205_vm6, %v189_v44, %v192_v40 }
  0xa5   :  { %v215_v8 = vsel %vm207_vm9, %v198_v55, %v214_v56  ;;  %v218_v9 = vsel %vm208_vm10, %v204_v1, 1326507024  ;;  %v211_v10 = vsel %vm207_vm9, %v195_v41, %v210_v3  ;;  %v518_v13 = vadd.s32 4294967169, %v659_v57 }
  0xa6   :  { %v216_v11 = vsel %vm206_vm8, %v213_v2, %v215_v8  ;;  %v219_v12 = vsel %vm207_vm9, %v201_v63, %v218_v9  ;;  %v130_v14 = vadd.s32 536870912, %v129_v5  ;;  %v212_v24 = vsel %vm206_vm8, %v209_v6, %v211_v10 }
  0xa7   :  { %v220_v15 = vsel %vm206_vm8, %v217_v4, %v219_v12  ;;  %v712_v16 = vmul.u32.u64.low %v653_v50, %v216_v11  ;;  %v713_v17 = vmul.u32.u64.high %v653_v50, %v216_v11, %v712_v16  ;;  %v287_v26 = vadd.s32 1, %v518_v13 }
  0xa8   :  { %v717_v18 = vmul.u32.u64.low %v653_v50, %v220_v15  ;;  %v718_v19 = vmul.u32.u64.high %v653_v50, %v220_v15, %v717_v18  ;;  %v131_v22 = vshrl.u32 %v130_v14, 30  ;;  %v284_v57 = vand.u32 8388607, %v277_v52 }
  0xa9   :  { %v231_v28 = vadd.s32 1, %v713_v17  ;;  %vm288_vm11 = vcmp.gt.s32.totalorder %v287_v26, 0  ;;  %v384_v29 = vand.u32 2139095040, %v655_v51  ;;  %v228_v31 = vmul.u32 %v653_v50, %v212_v24 }
  0xaa   :  { %v132_v27 = vshll.u32 %v131_v22, 30  ;;  %v155_v30 = vsub.s32 4, %v131_v22  ;;  %vm230_vm12 = vc.u32 %v718_v19, %v712_v16  ;;  %v289_v32 = vsel %vm288_vm11, %v287_v26, 0 }
  0xab   :  { %v232_v49 = vsel %vm230_vm12, %v231_v28, %v713_v17  ;;  %v285_v35 = vor.u32 8388608, %v284_v57  ;;  %v291_v39 = vand.u32 31, %v289_v32  ;;  %v385_v41 = vshrl.u32 %v384_v29, 23 }
  0xac   :  { %v133_v33 = vsub.s32 %v129_v5, %v132_v27  ;;  %v233_v34 = vadd.s32 %v232_v49, %v228_v31  ;;  %v733_v42 = vsel %vm71_vm13, %v155_v30, %v131_v22  ;;  %v735_v50 = vshrl.u32 %v289_v32, 5 }
  0xad   :  { %v292_v44 = vsub.s32 32, %v291_v39  ;;  %v125_v48 = vadd.s32 %v686_v37, %v683_v36  ;;  %v747_v55 = vshll.u32 %v285_v35, 8  ;;  %v381_v59 = vand.u32 2147483647, %v655_v51 }
  0xae   :  { %v135_v40 = vsub.s32 0, %v133_v33  ;;  %v234_v43 = vadd.s32 536870912, %v233_v34  ;;  %v158_v63 = vsel %vm739_vm14, 0, %v733_v42  ;;  %v754_v1 = vadd.s32 4294967169, %v385_v41 }
  0xaf   :  { %v295_v23 = vshrl.u32 %v599_v58, %v292_v44  ;;  %v294_v47 = vshll.u32 %v598_v54, %v291_v39  ;;  %v298_v36 = vshrl.u32 %v600_v60, %v292_v44  ;;  %vm309_vm15 = vcmp.lt.s32.totalorder %v735_v50, 1 }
  0xb0   :  { %v511_v46 = vmin.u32 %v135_v40, %v133_v33  ;;  %v745_v53 = vshrl.u32 %v234_v43, 30  ;;  %v300_v3 = vshll.u32 %v600_v60, %v291_v39  ;;  %v301_v56 = vshrl.u32 %v601_v62, %v292_v44 }
  0xb1   :  { %v304_v4 = vshrl.u32 %v602_v0, %v292_v44  ;;  %v297_v6 = vshll.u32 %v599_v58, %v291_v39  ;;  %v307_v8 = vshrl.u32 %v603_v7, %v292_v44  ;;  %vm310_vm0 = vcmp.lt.s32.totalorder %v735_v50, 2 }
  0xb2   :  { %v137_v61 = vclz %v511_v46  ;;  %v236_v2 = vshll.u32 %v745_v53, 30  ;;  %v296_v9 = vor.u32 %v295_v23, %v294_v47  ;;  %v302_v10 = vor.u32 %v301_v56, %v300_v3 }
  0xb3   :  { %v303_v11 = vshll.u32 %v601_v62, %v291_v39  ;;  %v299_v14 = vor.u32 %v298_v36, %v297_v6  ;;  %v306_v15 = vshll.u32 %v602_v0, %v291_v39  ;;  %vm312_vm2 = vcmp.lt.s32.totalorder %v735_v50, 4 }
  0xb4   :  { %v512_v37 = vadd.s32 4294967294, %v137_v61  ;;  %v763_v5 = vsub.s32 %v233_v34, %v236_v2  ;;  %vm175_vm3 = vcmp.lt.s32.totalorder %v636_v21, 0  ;;  %v293_v26 = vshrl.u32 %v598_v54, %v292_v44 }
  0xb5   :  { %v305_v22 = vor.u32 %v304_v4, %v303_v11  ;;  %v308_v57 = vor.u32 %v307_v8, %v306_v15  ;;  %v314_v27 = vsel %vm312_vm2, %v302_v10, 2102212464  ;;  %v259_v31 = vsub.s32 4, %v745_v53 }
  0xb6   :  { %vm513_vm1 = vcmp.lt.s32.totalorder %v512_v37, 0  ;;  %v239_v13 = vsub.s32 0, %v763_v5  ;;  %vm311_vm4 = vcmp.lt.s32.totalorder %v735_v50, 3  ;;  %v313_v49 = vsel %vm309_vm15, %v293_v26, %v296_v9 }
  0xb7   :  { %v140_v12 = vsel %vm513_vm1, 0, %v512_v37  ;;  %v317_v34 = vsel %vm309_vm15, %v296_v9, %v299_v14  ;;  %v315_v40 = vsel %vm311_vm4, %v299_v14, %v314_v27  ;;  %v318_v41 = vsel %vm312_vm2, %v305_v22, 920167782 }
  0xb8   :  { %v141_v17 = vsub.s32 32, %v140_v12  ;;  %v145_v18 = vsub.s32 4294967266, %v140_v12  ;;  %v515_v24 = vmin.u32 %v239_v13, %v763_v5  ;;  %v142_v28 = vshll.u32 %v133_v33, %v140_v12 }
  0xb9   :  { %v319_v43 = vsel %vm311_vm4, %v302_v10, %v318_v41  ;;  %v321_v44 = vsel %vm309_vm15, %v299_v14, %v302_v10  ;;  %v322_v46 = vsel %vm312_vm2, %v308_v57, 1326507024  ;;  %v229_v8 = vadd.s32 %v712_v16, %v718_v19 }
  0xba   :  { %v143_v29 = vshrl.u32 %v125_v48, %v141_v17  ;;  %v146_v30 = vadd.s32 127, %v145_v18  ;;  %v241_v32 = vclz %v515_v24  ;;  %v320_v23 = vsel %vm310_vm0, %v317_v34, %v319_v43 }
  0xbb   :  { %v323_v2 = vsel %vm311_vm4, %v305_v22, %v322_v46  ;;  %v794_v36 = vmul.u32.u64.low %v747_v55, %v320_v23  ;;  %v795_v37 = vmul.u32.u64.high %v747_v55, %v320_v23, %v794_v36  ;;  %v316_v11 = vsel %vm310_vm0, %v313_v49, %v315_v40 }
  0xbc   :  { %v144_v35 = vor.u32 %v143_v29, %v142_v28  ;;  %v147_v39 = vshll.u32 %v146_v30, 23  ;;  %v516_v33 = vadd.s32 4294967294, %v241_v32  ;;  %v324_v47 = vsel %vm310_vm0, %v321_v44, %v323_v2 }
  0xbd   :  { %v799_v4 = vmul.u32.u64.low %v747_v55, %v324_v47  ;;  %v800_v6 = vmul.u32.u64.high %v747_v55, %v324_v47, %v799_v4  ;;  %v162_v13 = vadd.s32 3, %v158_v63  ;;  %v260_v14 = vsel %vm175_vm3, %v259_v31, %v745_v53 }
  0xbe   :  { %v148_v48 = vor.u32 4788187, %v147_v39  ;;  %v151_v61 = vcvt.s32.f32 %v144_v35  ;;  %vm517_vm5 = vcmp.lt.s32.totalorder %v516_v33, 0  ;;  %v391_v15 = vadd.s32 1, %v754_v1 }
  0xbf   :  { %v244_v56 = vsel %vm517_vm5, 0, %v516_v33  ;;  %v335_v18 = vadd.s32 1, %v795_v37  ;;  %v332_v22 = vmul.u32 %v747_v55, %v316_v11  ;;  %vm334_vm6 = vc.u32 %v800_v6, %v794_v36 }
  0xc0   :  { %v149_v3 = vand.u32 2147483647, %v148_v48  ;;  %v245_v9 = vsub.s32 32, %v244_v56  ;;  %v249_v10 = vsub.s32 4294967266, %v244_v56  ;;  %v246_v17 = vshll.u32 %v763_v5, %v244_v56 }
  0xc1   :  { %vm392_vm7 = vcmp.gt.s32.totalorder %v391_v15, 0  ;;  %v336_v24 = vsel %vm334_vm6, %v335_v18, %v795_v37  ;;  %vm824_vm8 = vcmp.le.f32.partialorder %v173_v25, 0.7853982  ;;  %v388_v29 = vand.u32 8388607, %v381_v59 }
  0xc2   :  { %v152_v12 = vmul.f32 %v151_v61, %v149_v3  ;;  %v247_v16 = vshrl.u32 %v229_v8, %v245_v9  ;;  %v250_v19 = vadd.s32 127, %v249_v10  ;;  %v393_v53 = vsel %vm392_vm7, %v391_v15, 0 }
  0xc3   :  { %v337_v26 = vadd.s32 %v336_v24, %v332_v22  ;;  %v395_v55 = vand.u32 31, %v393_v53  ;;  %v262_v28 = vsel %vm824_vm8, 0, %v260_v14  ;;  %v835_v30 = vand.u32 3, %v162_v13 }
  0xc4   :  { %v153_v50 = vxor.u32 2147483648, %v152_v12  ;;  %v248_v42 = vor.u32 %v247_v16, %v246_v17  ;;  %v251_v63 = vshll.u32 %v250_v19, 23  ;;  %v266_v34 = vadd.s32 3, %v262_v28 }
  0xc5   :  { %v338_v25 = vadd.s32 536870912, %v337_v26  ;;  %v396_v31 = vsub.s32 32, %v395_v55  ;;  %vm168_vm9 = vcmp.eq.s32.totalorder %v835_v30, 2  ;;  %v389_v44 = vor.u32 8388608, %v388_v29 }
  0xc6   :  { %v154_v1 = vsel %vm71_vm13, %v153_v50, %v152_v12  ;;  %v252_v27 = vor.u32 4788187, %v251_v63  ;;  %v255_v49 = vcvt.s32.f32 %v248_v42  ;;  %v845_v46 = vshrl.u32 %v393_v53, 5 }
  0xc7   :  { %v157_v57 = vsel %vm739_vm14, %v634_v20, %v154_v1  ;;  %v837_v35 = vshrl.u32 %v338_v25, 30  ;;  %v399_v45 = vshrl.u32 %v599_v58, %v396_v31  ;;  %v402_v40 = vshrl.u32 %v600_v60, %v396_v31 }
  0xc8   :  { %556 = vcosq.f32 %v157_v57  ;;  %v253_v32 = vand.u32 2147483647, %v252_v27  ;;  %v405_v41 = vshrl.u32 %v601_v62, %v396_v31  ;;  %v408_v33 = vshrl.u32 %v602_v0, %v396_v31 }
  0xc9   :  { %558 = vsinq.f32 %v157_v57  ;;  %v340_v43 = vshll.u32 %v837_v35, 30  ;;  %v404_v48 = vshll.u32 %v600_v60, %v395_v55  ;;  %vm165_vm10 = vcmp.eq.s32.totalorder %v835_v30, 0 }
  0xca   :  { %v256_v39 = vmul.f32 %v255_v49, %v253_v32  ;;  %v398_v23 = vshll.u32 %v598_v54, %v395_v55  ;;  %v401_v2 = vshll.u32 %v599_v58, %v395_v55  ;;  %v407_v47 = vshll.u32 %v601_v62, %v395_v55 }
  0xcb   :  { %vm164_vm11 = vcmp.lt.s32.totalorder %v835_v30, 2  ;;  %v853_v37 = vand.u32 3, %v266_v34  ;;  %v855_v3 = vsub.s32 %v337_v26, %v340_v43  ;;  %v406_v56 = vor.u32 %v405_v41, %v404_v48 }
  0xcc   :  { %v257_v61 = vxor.u32 2147483648, %v256_v39  ;;  %v411_v4 = vshrl.u32 %v603_v7, %v396_v31  ;;  %vm161_vm12 = vweird.f32 %v634_v20  ;;  %v400_v8 = vor.u32 %v399_v45, %v398_v23 }
  0xcd   :  { %v403_v9 = vor.u32 %v402_v40, %v401_v2  ;;  %v409_v10 = vor.u32 %v408_v33, %v407_v47  ;;  %v343_v62 = vsub.s32 0, %v855_v3  ;;  %v410_v11 = vshll.u32 %v602_v0, %v395_v55 }
  0xce   :  { %v258_v60 = vsel %vm175_vm3, %v257_v61, %v256_v39  ;;  %v429_v12 = vshll.u32 %v389_v44, 8  ;;  %v397_v7 = vshrl.u32 %v598_v54, %v396_v31  ;;  %vm413_vm13 = vcmp.lt.s32.totalorder %v845_v46, 1 }
  0xcf   :  { %v261_v58 = vsel %vm824_vm8, %v636_v21, %v258_v60  ;;  %vm416_vm14 = vcmp.lt.s32.totalorder %v845_v46, 4  ;;  %v519_v14 = vmin.u32 %v343_v62, %v855_v3  ;;  %v412_v15 = vor.u32 %v411_v4, %v410_v11 }
  0xd0   :  { %560 = vcosq.f32 %v261_v58  ;;  %v418_v17 = vsel %vm416_vm14, %v406_v56, 2102212464  ;;  %vm414_vm15 = vcmp.lt.s32.totalorder %v845_v46, 2  ;;  %v421_v0 = vsel %vm413_vm13, %v400_v8, %v403_v9 }
  0xd1   :  { %562 = vsinq.f32 %v261_v58  ;;  %v422_v54 = vsel %vm416_vm14, %v409_v10, 920167782  ;;  %v345_v50 = vclz %v519_v14  ;;  %vm415_vm0 = vcmp.lt.s32.totalorder %v845_v46, 3 }
  0xd2   :  { %v557_v13 = vpop.eup %556  ;;  %v417_v22 = vsel %vm413_vm13, %v397_v7, %v400_v8  ;;  %v419_v63 = vsel %vm415_vm0, %v403_v9, %v418_v17  ;;  %v423_v24 = vsel %vm415_vm0, %v406_v56, %v422_v54  ;;  %v425_v53 = vsel %vm413_vm13, %v403_v9, %v406_v56 }
  0xd3   :  { %v559_v16 = vpop.eup %558  ;;  %v169_v19 = vxor.u32 2147483648, %v557_v13  ;;  %v520_v5 = vadd.s32 4294967294, %v345_v50  ;;  %v424_v26 = vsel %vm414_vm15, %v421_v0, %v423_v24  ;;  %v426_v55 = vsel %vm416_vm14, %v412_v15, 1326507024 }
  0xd4   :  { %v166_v18 = vxor.u32 2147483648, %v559_v16  ;;  %v427_v27 = vsel %vm415_vm0, %v409_v10, %v426_v55  ;;  %v892_v28 = vmul.u32.u64.low %v429_v12, %v424_v26  ;;  %v893_v29 = vmul.u32.u64.high %v429_v12, %v424_v26, %v892_v28 }
  0xd5   :  { %v170_v42 = vsel %vm168_vm9, %v169_v19, %v559_v16  ;;  %vm521_vm1 = vcmp.lt.s32.totalorder %v520_v5, 0  ;;  %v428_v31 = vsel %vm414_vm15, %v425_v53, %v427_v27  ;;  %v333_v30 = vadd.s32 %v794_v36, %v800_v6 }
  0xd6   :  { %v167_v1 = vsel %vm165_vm10, %v557_v13, %v166_v18  ;;  %v348_v32 = vsel %vm521_vm1, 0, %v520_v5  ;;  %v900_v49 = vmul.u32.u64.low %v429_v12, %v428_v31  ;;  %v901_v34 = vmul.u32.u64.high %v429_v12, %v428_v31, %v900_v49 }
  0xd7   :  { %v171_v57 = vsel %vm164_vm11, %v167_v1, %v170_v42  ;;  %v349_v45 = vsub.s32 32, %v348_v32  ;;  %v353_v39 = vsub.s32 4294967266, %v348_v32  ;;  %v420_v40 = vsel %vm414_vm15, %v417_v22, %v419_v63 }
  0xd8   :  { %v172_v25 = vsel %vm161_vm12, nan, %v171_v57  ;;  %vm269_vm2 = vcmp.eq.s32.totalorder %v853_v37, 0  ;;  %v439_v41 = vadd.s32 1, %v893_v29  ;;  %v350_v44 = vshll.u32 %v855_v3, %v348_v32 }
  0xd9   :  { %485 = vst [vmem:[#allocation2] sm:$0xff] %v172_v25  ;;  %489 = vst [vmem:[#allocation2 + $0x20] sm:$0xff] %v172_v25  ;;  %v351_v48 = vshrl.u32 %v333_v30, %v349_v45  ;;  %v354_v61 = vadd.s32 127, %v353_v39  ;;  %vm272_vm3 = vcmp.eq.s32.totalorder %v853_v37, 2  ;;  %v436_v36 = vmul.u32 %v429_v12, %v420_v40 }
  0xda   :  { %v561_v20 = vpop.eup %560  ;;  %vm438_vm4 = vc.u32 %v901_v34, %v892_v28  ;;  %vm268_vm5 = vcmp.lt.s32.totalorder %v853_v37, 2  ;;  %vm265_vm6 = vweird.f32 %v636_v21  ;;  %v363_v12 = vsub.s32 4, %v837_v35 }
  0xdb   :  { %v563_v33 = vpop.eup %562  ;;  %v273_v43 = vxor.u32 2147483648, %v561_v20  ;;  %v352_v46 = vor.u32 %v351_v48, %v350_v44  ;;  %v355_v2 = vshll.u32 %v354_v61, 23  ;;  %v440_v47 = vsel %vm438_vm4, %v439_v41, %v893_v29 }
  0xdc   :  { %v270_v23 = vxor.u32 2147483648, %v563_v33  ;;  %v441_v3 = vadd.s32 %v440_v47, %v436_v36  ;;  %vm279_vm7 = vcmp.lt.s32.totalorder %v646_v38, 0  ;;  %vm278_vm8 = vcmp.le.f32.partialorder %v277_v52, 0.7853982 }
  0xdd   :  { %v274_v6 = vsel %vm272_vm3, %v273_v43, %v563_v33  ;;  %v356_v60 = vor.u32 4788187, %v355_v2  ;;  %v359_v58 = vcvt.s32.f32 %v352_v46  ;;  %v364_v14 = vsel %vm279_vm7, %v363_v12, %v837_v35 }
  0xde   :  { %v271_v56 = vsel %vm269_vm2, %v561_v20, %v270_v23  ;;  %v442_v9 = vadd.s32 536870912, %v441_v3  ;;  %v366_v16 = vsel %vm278_vm8, 0, %v364_v14  ;;  %v437_v42 = vadd.s32 %v892_v28, %v901_v34 }
  0xdf   :  { %v275_v4 = vsel %vm268_vm5, %v271_v56, %v274_v6  ;;  %v357_v10 = vand.u32 2147483647, %v356_v60  ;;  %v370_v54 = vadd.s32 3, %v366_v16  ;;  %vm369_vm13 = vweird.f32 %v646_v38 }
  0xe0   :  { %v276_v8 = vsel %vm265_vm6, nan, %v275_v4  ;;  %v443_v62 = vshrl.u32 %v442_v9, 30  ;;  %vm383_vm14 = vcmp.lt.s32.totalorder %v655_v51, 0  ;;  %vm382_vm15 = vcmp.le.f32.partialorder %v381_v59, 0.7853982 }
  0xe1   :  { %486 = vst [vmem:[#allocation2 + $0x8] sm:$0xff] %v276_v8  ;;  %490 = vst [vmem:[#allocation2 + $0x28] sm:$0xff] %v276_v8  ;;  %v360_v11 = vmul.f32 %v359_v58, %v357_v10  ;;  %v371_v50 = vand.u32 3, %v370_v54  ;;  %vm473_vm3 = vweird.f32 %v655_v51 }
  0xe2   :  { %v444_v7 = vshll.u32 %v443_v62, 30  ;;  %v467_v45 = vsub.s32 4, %v443_v62 }
  0xe3   :  { %v361_v13 = vxor.u32 2147483648, %v360_v11  ;;  %vm376_vm10 = vcmp.eq.s32.totalorder %v371_v50, 2  ;;  %vm373_vm11 = vcmp.eq.s32.totalorder %v371_v50, 0  ;;  %vm372_vm12 = vcmp.lt.s32.totalorder %v371_v50, 2 }
  0xe4   :  { %v445_v37 = vsub.s32 %v441_v3, %v444_v7  ;;  %v468_v20 = vsel %vm383_vm14, %v467_v45, %v443_v62 }
  0xe5   :  { %v362_v21 = vsel %vm279_vm7, %v361_v13, %v360_v11 }
  0xe6   :  { %v365_v15 = vsel %vm278_vm8, %v646_v38, %v362_v21  ;;  %v447_v17 = vsub.s32 0, %v445_v37  ;;  %v470_v38 = vsel %vm382_vm15, 0, %v468_v20 }
  0xe7   :  { %564 = vcosq.f32 %v365_v15  ;;  %v474_v33 = vadd.s32 3, %v470_v38 }
  0xe8   :  { %566 = vsinq.f32 %v365_v15  ;;  %v523_v19 = vmin.u32 %v447_v17, %v445_v37 }
  0xe9   :  { %v475_v43 = vand.u32 3, %v474_v33 }
  0xea   :  { %v449_v0 = vclz %v523_v19 }
  0xeb   :  { %vm480_vm0 = vcmp.eq.s32.totalorder %v475_v43, 2  ;;  %vm477_vm1 = vcmp.eq.s32.totalorder %v475_v43, 0  ;;  %vm476_vm2 = vcmp.lt.s32.totalorder %v475_v43, 2 }
  0xec   :  { %v524_v18 = vadd.s32 4294967294, %v449_v0 }
  0xee   :  { %vm525_vm9 = vcmp.lt.s32.totalorder %v524_v18, 0 }
  0xef   :  { %v452_v22 = vsel %vm525_vm9, 0, %v524_v18 }
  0xf0   :  { %v453_v52 = vsub.s32 32, %v452_v22  ;;  %v457_v63 = vsub.s32 4294967266, %v452_v22  ;;  %v454_v1 = vshll.u32 %v445_v37, %v452_v22 }
  0xf1   :  { %v565_v24 = vpop.eup %564 }
  0xf2   :  { %v567_v35 = vpop.eup %566  ;;  %v377_v53 = vxor.u32 2147483648, %v565_v24  ;;  %v455_v5 = vshrl.u32 %v437_v42, %v453_v52  ;;  %v458_v26 = vadd.s32 127, %v457_v63 }
  0xf3   :  { %v374_v55 = vxor.u32 2147483648, %v567_v35 }
  0xf4   :  { %v378_v57 = vsel %vm376_vm10, %v377_v53, %v567_v35  ;;  %v456_v27 = vor.u32 %v455_v5, %v454_v1  ;;  %v459_v29 = vshll.u32 %v458_v26, 23 }
  0xf5   :  { %v375_v25 = vsel %vm373_vm11, %v565_v24, %v374_v55 }
  0xf6   :  { %v379_v31 = vsel %vm372_vm12, %v375_v25, %v378_v57  ;;  %v460_v28 = vor.u32 4788187, %v459_v29  ;;  %v463_v34 = vcvt.s32.f32 %v456_v27 }
  0xf7   :  { %v380_v32 = vsel %vm369_vm13, nan, %v379_v31 }
  0xf8   :  { %v461_v49 = vand.u32 2147483647, %v460_v28  ;;  %487 = vst [vmem:[#allocation2 + $0x10] sm:$0xff] %v380_v32  ;;  %491 = vst [vmem:[#allocation2 + $0x30] sm:$0xff] %v380_v32 }
  0xfa   :  { %v464_v30 = vmul.f32 %v463_v34, %v461_v49 }
  0xfc   :  { %v465_v39 = vxor.u32 2147483648, %v464_v30 }
  0xfe   :  { %v466_v40 = vsel %vm383_vm14, %v465_v39, %v464_v30 }
  0xff   :  { %v469_v41 = vsel %vm382_vm15, %v655_v51, %v466_v40 }
 0x100   :  { %568 = vcosq.f32 %v469_v41 }
 0x101   :  { %570 = vsinq.f32 %v469_v41 }
 0x10a   :  { %v569_v44 = vpop.eup %568 }
 0x10b   :  { %v571_v48 = vpop.eup %570  ;;  %v481_v61 = vxor.u32 2147483648, %v569_v44 }
 0x10c   :  { %v478_v23 = vxor.u32 2147483648, %v571_v48 }
 0x10d   :  { %v482_v36 = vsel %vm480_vm0, %v481_v61, %v571_v48 }
 0x10e   :  { %v479_v59 = vsel %vm477_vm1, %v569_v44, %v478_v23 }
 0x10f   :  { %v483_v6 = vsel %vm476_vm2, %v479_v59, %v482_v36 }
 0x110   :  { %v484_v46 = vsel %vm473_vm3, nan, %v483_v6 }
 0x111   :  { %488 = vst [vmem:[#allocation2 + $0x18] sm:$0xff] %v484_v46  ;;  %492 = vst [vmem:[#allocation2 + $0x38] sm:$0xff] %v484_v46 }
 0x112   :  { %583 = shalt.err (!%p580_p4)
}
 0x113   :  { %s584_s20 = scalar_lea.hbm %s946_s2, 1024 }
 0x114   :  { %p585_p5 = scmp.ne.s32.totalorder %s946_s2, %s584_s20  ;;  %p588_p6 = scmp.lt.u32.totalorder %s584_s20, %s946_s2 }
 0x116   :  { %p590_p7 = pnand %p588_p6, %p585_p5 }
 0x118   :  { %593 = shalt.err (!%p590_p7)
}
 0x119   :  { %s605_s25 = smov 256   ;;  %s606_s26 = smov 16  }
 0x11a   :  { %504 = dma.vmem_to_hbm [thread:$0]  %s499_s1, 1024, %s946_s2, [#allocation3], %s605_s25, %s605_s25, %s606_s26  }
 0x11b   :  { %594 = dma.done.wait [#allocation3], 1024  }
 0x11c   :  { %595 = vsyncadd [#allocation3], 4294966272 }
 0x11d   :  { %508 = vsyncpa [#allocation3], 1 }

</bundles_post_ra>
